<compile_context>
chip_gen: v7x
topology: tpu7x:2x2x1
jax: 0.10.0
libtpu: 0.0.40
codegen_flags: <defaults>
</compile_context>

<pallas_src>
import jax
import jax.numpy as jnp
from jax.experimental import pallas as pl
from jax.experimental.pallas import tpu as pltpu

DIM_IN = 784
HIDDEN = 128
DIM_OUT = 47


# --------------------------------------------------------------------------
# Kernel factory: one grid step processes a block of `ts` timesteps.
# --------------------------------------------------------------------------
def _make_rnn_seq_kernel(ts, b, t_total, t_pad):
    guard_tail = (t_pad != t_total)  # last block contains zero-padded steps

    def kernel(x_ref, h0_ref, wih_t_ref, whh_t_ref, wfw_t_ref,
               y_ref, hT_ref, h_scr, hblk_scr):
        """One block of `ts` timesteps.

        x_ref     : (ts*b, DIM_IN)   bf16 -- this block's inputs (flattened T*B)
        h0_ref    : (b, HIDDEN)      f32  -- initial hidden state (constant idx)
        wih_t_ref : (DIM_IN, HIDDEN) bf16 -- W_ih^T  (VMEM-resident, constant idx)
        whh_t_ref : (HIDDEN, HIDDEN) bf16 -- W_hh^T
        wfw_t_ref : (HIDDEN, DIM_OUT)bf16 -- W_fw^T
        y_ref     : (ts*b, DIM_OUT)  f32  -- this block's outputs
        hT_ref    : (b, HIDDEN)      f32  -- final hidden state (constant idx)
        h_scr     : VMEM (b, HIDDEN) f32  -- hidden-state carry across blocks
        hblk_scr  : VMEM (ts*b, HIDDEN) f32 -- per-step hidden states of block
        """
        blk = pl.program_id(0)

        @pl.when(blk == 0)
        def _init():
            h_scr[...] = h0_ref[...]

        w_dtype = whh_t_ref.dtype

        # ---- batched input projection for the whole timestep block --------
        # (ts*b, 784) @ (784, 128) -> f32 : one well-shaped MXU matmul.
        pre_x = jnp.dot(x_ref[...], wih_t_ref[...],
                        preferred_element_type=jnp.float32)

        # ---- sequential recurrence over the ts timesteps of this block ----
        h = h_scr[...]
        for s in range(ts):                      # static, fully unrolled
            pre = pre_x[s * b:(s + 1) * b, :] + jnp.dot(
                h.astype(w_dtype), whh_t_ref[...],
                preferred_element_type=jnp.float32)
            h = jnp.tanh(pre)
            hblk_scr[pl.ds(s * b, b), :] = h
            if guard_tail:
                # Record the true final hidden state exactly at global step
                # t_total-1; later (zero-padded) steps are discarded.
                @pl.when(blk * ts + s == t_total - 1)
                def _store_h_final(h=h):
                    hT_ref[...] = h
        h_scr[...] = h

        # ---- batched output head over the whole timestep block ------------
        # (ts*b, 128) @ (128, 47) -> f32 : one matmul + one store per block.
        y_ref[...] = jnp.dot(hblk_scr[...].astype(w_dtype), wfw_t_ref[...],
                             preferred_element_type=jnp.float32)

        if not guard_tail:
            @pl.when(blk == pl.num_programs(0) - 1)
            def _store_h_last():
                hT_ref[...] = h_scr[...]

    return kernel


# --------------------------------------------------------------------------
# One-time weight preparation (do this at model-init, NOT per call).
# --------------------------------------------------------------------------
def prepare_weights(w_ih, w_hh, w_fw, dtype=jnp.bfloat16):
    """Transpose to (in, out) layout and cast to bf16.

    w_ih : (HIDDEN, DIM_IN)   PyTorch RNNCell weight_ih layout
    w_hh : (HIDDEN, HIDDEN)   PyTorch RNNCell weight_hh layout
    w_fw : (DIM_OUT, HIDDEN)  PyTorch Linear weight layout
    """
    wih_t = jnp.asarray(w_ih, jnp.float32).T.astype(dtype)   # (784, 128)
    whh_t = jnp.asarray(w_hh, jnp.float32).T.astype(dtype)   # (128, 128)
    wfw_t = jnp.asarray(w_fw, jnp.float32).T.astype(dtype)   # (128, 47)
    return wih_t, whh_t, wfw_t


# --------------------------------------------------------------------------
# Fused multi-timestep forward.
# --------------------------------------------------------------------------
def rosenbaum_rnn_sequence(xs, hx0, prepared_weights, *, max_block_steps=16):
    """Run T RNN steps in a single pallas_call.

    xs  : (T, B, DIM_IN) float32
    hx0 : (B, HIDDEN)    float32
    Returns (outputs (T, B, DIM_OUT) f32, final hidden (B, HIDDEN) f32).
    """
    wih_t, whh_t, wfw_t = prepared_weights
    T, B, d_in = xs.shape
    assert d_in == DIM_IN, "Input shape is not correct."
    assert B == hx0.shape[0], "Batch size is not correct."

    ts = min(T, max_block_steps)          # timesteps per grid iteration
    n_blocks = pl.cdiv(T, ts)
    t_pad = n_blocks * ts

    # Cast activations to bf16 once (halves input DMA) and flatten
    # (T, B, 784) -> (T*B, 784) so blocks are sublane-dense.
    x2d = xs.reshape(T * B, DIM_IN).astype(wih_t.dtype)
    if t_pad != T:
        pad = jnp.zeros(((t_pad - T) * B, DIM_IN), x2d.dtype)
        x2d = jnp.concatenate([x2d, pad], axis=0)

    w_isz = jnp.dtype(wih_t.dtype).itemsize
    flops = 2 * t_pad * B * (DIM_IN * HIDDEN + HIDDEN * HIDDEN + HIDDEN * DIM_OUT)
    transcendentals = t_pad * B * HIDDEN
    bytes_accessed = (
        (wih_t.size + whh_t.size + wfw_t.size) * w_isz   # weights (once)
        + t_pad * B * DIM_IN * w_isz                     # x in (bf16)
        + t_pad * B * DIM_OUT * 4                        # y out
        + 2 * B * HIDDEN * 4)                            # h0 in + hT out

    kernel = _make_rnn_seq_kernel(ts=ts, b=B, t_total=T, t_pad=t_pad)

    ys2d, h_t = pl.pallas_call(
        kernel,
        grid=(n_blocks,),
        in_specs=[
            # per-block slab of ts timesteps (flattened rows)
            pl.BlockSpec((ts * B, DIM_IN), lambda i: (i, 0)),
            # initial hidden: constant index -> fetched once
            pl.BlockSpec((B, HIDDEN), lambda i: (0, 0)),
            # weights: constant index -> DMA'd once, VMEM-resident for grid
            pl.BlockSpec((DIM_IN, HIDDEN), lambda i: (0, 0)),
            pl.BlockSpec((HIDDEN, HIDDEN), lambda i: (0, 0)),
            pl.BlockSpec((HIDDEN, DIM_OUT), lambda i: (0, 0)),
        ],
        out_specs=(
            pl.BlockSpec((ts * B, DIM_OUT), lambda i: (i, 0)),
            pl.BlockSpec((B, HIDDEN), lambda i: (0, 0)),
        ),
        out_shape=(
            jax.ShapeDtypeStruct((t_pad * B, DIM_OUT), jnp.float32),
            jax.ShapeDtypeStruct((B, HIDDEN), jnp.float32),
        ),
        scratch_shapes=[
            pltpu.VMEM((B, HIDDEN), jnp.float32),        # hidden-state carry
            pltpu.VMEM((ts * B, HIDDEN), jnp.float32),   # block hidden states
        ],
        compiler_params=pltpu.CompilerParams(
            dimension_semantics=("arbitrary",)),          # sequential carry
        cost_estimate=pl.CostEstimate(
            flops=flops, transcendentals=transcendentals,
            bytes_accessed=bytes_accessed),
    )(x2d, jnp.asarray(hx0, jnp.float32), wih_t, whh_t, wfw_t)

    if t_pad != T:
        ys2d = ys2d[:T * B]
    ys = ys2d.reshape(T, B, DIM_OUT)
    return ys, h_t


# --------------------------------------------------------------------------
# Single-step forward matching the PyTorch module's forward() signature.
# --------------------------------------------------------------------------
def rosenbaum_rnn_forward(x, hx1, prepared_weights):
    """x: (B, DIM_IN), hx1: (B, HIDDEN). Returns ((x, hx1_new), output)."""
    assert x.shape[1] == DIM_IN, "Input shape is not correct."
    assert x.shape[0] == hx1.shape[0], "Batch size is not correct."
    ys, h_new = rosenbaum_rnn_sequence(x[None], hx1, prepared_weights)
    return (x, h_new), ys[0]


# --------------------------------------------------------------------------
# Pure-JAX references.
# --------------------------------------------------------------------------
def _reference_step_f32(x, h, w_ih, w_hh, w_fw):
    h_new = jnp.tanh(x @ w_ih.T + h @ w_hh.T)
    return h_new, h_new @ w_fw.T


def _reference_step_matched(x, h, wih_t, whh_t, wfw_t):
    """Same bf16-operand / f32-accumulate path as the kernel."""
    d = wih_t.dtype
    pre = (jnp.dot(x.astype(d), wih_t, preferred_element_type=jnp.float32)
           + jnp.dot(h.astype(d), whh_t, preferred_element_type=jnp.float32))
    h_new = jnp.tanh(pre)
    y = jnp.dot(h_new.astype(d), wfw_t, preferred_element_type=jnp.float32)
    return h_new, y


if __name__ == "__main__":
    key = jax.random.PRNGKey(0)
    k_x, k_ih, k_hh, k_fw = jax.random.split(key, 4)

    B = 2   # module.reset_hidden(batch_size=2)
    T = 8   # short sequence to exercise the fused-timestep block

    # PyTorch-default init U(-1/sqrt(H), 1/sqrt(H)).
    bound = 1.0 / jnp.sqrt(jnp.float32(HIDDEN))
    w_ih = jax.random.uniform(k_ih, (HIDDEN, DIM_IN), jnp.float32, -bound, bound)
    w_hh = jax.random.uniform(k_hh, (HIDDEN, HIDDEN), jnp.float32, -bound, bound)
    w_fw = jax.random.uniform(k_fw, (DIM_OUT, HIDDEN), jnp.float32, -bound, bound)

    xs = jax.random.normal(k_x, (T, B, DIM_IN), jnp.float32)
    hx0 = jnp.zeros((B, HIDDEN), jnp.float32)   # reset_hidden(B)

    # One-time weight preparation (transpose + bf16 cast).
    prepared = prepare_weights(w_ih, w_hh, w_fw, dtype=jnp.bfloat16)
    jax.block_until_ready(prepared)

    # ---- Single step (matches PyTorch forward()) -------------------------
    (x_out, h1), y1 = rosenbaum_rnn_forward(xs[0], hx0, prepared)
    jax.block_until_ready((x_out, h1, y1))
    assert h1.shape == (B, HIDDEN) and y1.shape == (B, DIM_OUT)

    # vs. the exact f32 PyTorch math (loose tol: bf16 operands over K=784)
    h1_f32, y1_f32 = _reference_step_f32(xs[0], hx0, w_ih, w_hh, w_fw)
    assert jnp.allclose(h1, h1_f32, atol=1e-1, rtol=1e-1)
    assert jnp.allclose(y1, y1_f32, atol=1e-1, rtol=1e-1)

    # vs. a dtype-matched JAX reference (tight tol)
    h1_m, y1_m = _reference_step_matched(xs[0], hx0, *prepared)
    assert jnp.allclose(h1, h1_m, atol=5e-3, rtol=5e-3)
    assert jnp.allclose(y1, y1_m, atol=5e-3, rtol=5e-3)

    # ---- Fused sequence, single timestep block ----------------------------
    ys, h_t = rosenbaum_rnn_sequence(xs, hx0, prepared)
    jax.block_until_ready((ys, h_t))
    assert ys.shape == (T, B, DIM_OUT) and h_t.shape == (B, HIDDEN)

    h_ref = hx0
    for t in range(T):
        h_ref, y_ref = _reference_step_matched(xs[t], h_ref, *prepared)
        assert jnp.allclose(ys[t], y_ref, atol=5e-3, rtol=5e-3)
    assert jnp.allclose(h_t, h_ref, atol=5e-3, rtol=5e-3)

    # ---- Multi-block grid + padded tail (carry and tail-guard paths) ------
    T2 = 11
    xs2 = jax.random.normal(jax.random.fold_in(k_x, 1), (T2, B, DIM_IN),
                            jnp.float32)
    ys2, h_t2 = rosenbaum_rnn_sequence(xs2, hx0, prepared, max_block_steps=4)
    jax.block_until_ready((ys2, h_t2))
    assert ys2.shape == (T2, B, DIM_OUT) and h_t2.shape == (B, HIDDEN)

    h_ref = hx0
    for t in range(T2):
        h_ref, y_ref = _reference_step_matched(xs2[t], h_ref, *prepared)
        assert jnp.allclose(ys2[t], y_ref, atol=5e-3, rtol=5e-3)
    assert jnp.allclose(h_t2, h_ref, atol=5e-3, rtol=5e-3)

    # TODO(synk): biological=True branch (leaky-integrator path) not implemented;
    # the module's default (biological=False) path is what is kernelized here.
    print("KERNEL_OK")
</pallas_src>

<mosaic_0001>
module attributes {stable_mosaic.version = 11 : i64} {
  func.func @kernel(%arg0: i32, %arg1: memref<2x784xbf16, #tpu.memory_space<vmem>>, %arg2: memref<2x128xf32, #tpu.memory_space<vmem>>, %arg3: memref<784x128xbf16, #tpu.memory_space<vmem>>, %arg4: memref<128x128xbf16, #tpu.memory_space<vmem>>, %arg5: memref<128x47xbf16, #tpu.memory_space<vmem>>, %arg6: memref<2x47xf32, #tpu.memory_space<vmem>>, %arg7: memref<2x128xf32, #tpu.memory_space<vmem>>, %arg8: memref<2x128xf32, #tpu.memory_space<vmem>>, %arg9: memref<2x128xf32, #tpu.memory_space<vmem>>) attributes {dimension_semantics = [#tpu.dimension_semantics<arbitrary>], iteration_bounds = array<i64: 1>, scalar_prefetch = 0 : i64, scratch_operands = 2 : i64, tpu.core_type = #tpu.core_type<tc>, window_params = [{transform_indices = @transform_0, window_bounds = array<i64: 2, 784>}, {pipeline_mode = #tpu.pipeline_mode<synchronous>, transform_indices = @transform_1, window_bounds = array<i64: 2, 128>}, {pipeline_mode = #tpu.pipeline_mode<synchronous>, transform_indices = @transform_2, window_bounds = array<i64: 784, 128>}, {pipeline_mode = #tpu.pipeline_mode<synchronous>, transform_indices = @transform_3, window_bounds = array<i64: 128, 128>}, {pipeline_mode = #tpu.pipeline_mode<synchronous>, transform_indices = @transform_4, window_bounds = array<i64: 128, 47>}, {transform_indices = @transform_5, window_bounds = array<i64: 2, 47>}, {pipeline_mode = #tpu.pipeline_mode<synchronous>, transform_indices = @transform_6, window_bounds = array<i64: 2, 128>}]} {
    %c0_i32 = arith.constant 0 : i32
    %0 = arith.cmpi eq, %arg0, %c0_i32 : i32
    %1 = arith.extui %0 : i1 to i32
    %c0_i32_0 = arith.constant 0 : i32
    %2 = arith.cmpi ne, %1, %c0_i32_0 : i32
    scf.if %2 {
      %c0_22 = arith.constant 0 : index
      %c0_23 = arith.constant 0 : index
      %22 = vector.load %arg2[%c0_22, %c0_23] : memref<2x128xf32, #tpu.memory_space<vmem>>, vector<2x128xf32>
      %c0_24 = arith.constant 0 : index
      %c0_25 = arith.constant 0 : index
      %23 = vector.load %arg8[%c0_24, %c0_25] : memref<2x128xf32, #tpu.memory_space<vmem>>, vector<2x128xf32>
      tpu.vector_store %arg8[%c0_24, %c0_25], %22 {strides = array<i32>} : memref<2x128xf32, #tpu.memory_space<vmem>>, vector<2x128xf32>,
    } else {
    }
    %c0 = arith.constant 0 : index
    %c0_1 = arith.constant 0 : index
    %3 = vector.load %arg1[%c0, %c0_1] : memref<2x784xbf16, #tpu.memory_space<vmem>>, vector<2x784xbf16>
    %c0_2 = arith.constant 0 : index
    %c0_3 = arith.constant 0 : index
    %4 = vector.load %arg3[%c0_2, %c0_3] : memref<784x128xbf16, #tpu.memory_space<vmem>>, vector<784x128xbf16>
    %cst = arith.constant dense<0.000000e+00> : vector<2x128xf32>
    %5 = tpu.matmul %3, %4, %cst {dimension_numbers = #tpu.dot_dimension_numbers<[1], [0], [0], [1], [0, 0, 1, 1], [], []>} : vector<2x784xbf16>, vector<784x128xbf16>, vector<2x128xf32> -> vector<2x128xf32>
    %c0_4 = arith.constant 0 : index
    %c0_5 = arith.constant 0 : index
    %6 = vector.load %arg8[%c0_4, %c0_5] : memref<2x128xf32, #tpu.memory_space<vmem>>, vector<2x128xf32>
    %7 = arith.truncf %6 : vector<2x128xf32> to vector<2x128xbf16>
    %c0_6 = arith.constant 0 : index
    %c0_7 = arith.constant 0 : index
    %8 = vector.load %arg4[%c0_6, %c0_7] : memref<128x128xbf16, #tpu.memory_space<vmem>>, vector<128x128xbf16>
    %cst_8 = arith.constant dense<0.000000e+00> : vector<2x128xf32>
    %9 = tpu.matmul %7, %8, %cst_8 {dimension_numbers = #tpu.dot_dimension_numbers<[1], [0], [0], [1], [0, 0, 1, 1], [], []>} : vector<2x128xbf16>, vector<128x128xbf16>, vector<2x128xf32> -> vector<2x128xf32>
    %10 = arith.addf %5, %9 : vector<2x128xf32>
    %11 = math.tanh %10 : vector<2x128xf32>
    %c0_9 = arith.constant 0 : index
    %c0_10 = arith.constant 0 : index
    %12 = vector.load %arg9[%c0_9, %c0_10] : memref<2x128xf32, #tpu.memory_space<vmem>>, vector<2x128xf32>
    tpu.vector_store %arg9[%c0_9, %c0_10], %11 {strides = array<i32>} : memref<2x128xf32, #tpu.memory_space<vmem>>, vector<2x128xf32>,
    %c0_11 = arith.constant 0 : index
    %c0_12 = arith.constant 0 : index
    %13 = vector.load %arg8[%c0_11, %c0_12] : memref<2x128xf32, #tpu.memory_space<vmem>>, vector<2x128xf32>
    tpu.vector_store %arg8[%c0_11, %c0_12], %11 {strides = array<i32>} : memref<2x128xf32, #tpu.memory_space<vmem>>, vector<2x128xf32>,
    %c0_13 = arith.constant 0 : index
    %c0_14 = arith.constant 0 : index
    %14 = vector.load %arg9[%c0_13, %c0_14] : memref<2x128xf32, #tpu.memory_space<vmem>>, vector<2x128xf32>
    %15 = arith.truncf %14 : vector<2x128xf32> to vector<2x128xbf16>
    %c0_15 = arith.constant 0 : index
    %c0_16 = arith.constant 0 : index
    %16 = vector.load %arg5[%c0_15, %c0_16] : memref<128x47xbf16, #tpu.memory_space<vmem>>, vector<128x47xbf16>
    %cst_17 = arith.constant dense<0.000000e+00> : vector<2x47xf32>
    %17 = tpu.matmul %15, %16, %cst_17 {dimension_numbers = #tpu.dot_dimension_numbers<[1], [0], [0], [1], [0, 0, 1, 1], [], []>} : vector<2x128xbf16>, vector<128x47xbf16>, vector<2x47xf32> -> vector<2x47xf32>
    %c0_18 = arith.constant 0 : index
    %c0_19 = arith.constant 0 : index
    %18 = vector.load %arg6[%c0_18, %c0_19] : memref<2x47xf32, #tpu.memory_space<vmem>>, vector<2x47xf32>
    tpu.vector_store %arg6[%c0_18, %c0_19], %17 {strides = array<i32>} : memref<2x47xf32, #tpu.memory_space<vmem>>, vector<2x47xf32>,
    %c0_i32_20 = arith.constant 0 : i32
    %19 = arith.cmpi eq, %arg0, %c0_i32_20 : i32
    %20 = arith.extui %19 : i1 to i32
    %c0_i32_21 = arith.constant 0 : i32
    %21 = arith.cmpi ne, %20, %c0_i32_21 : i32
    scf.if %21 {
      %c0_22 = arith.constant 0 : index
      %c0_23 = arith.constant 0 : index
      %22 = vector.load %arg8[%c0_22, %c0_23] : memref<2x128xf32, #tpu.memory_space<vmem>>, vector<2x128xf32>
      %c0_24 = arith.constant 0 : index
      %c0_25 = arith.constant 0 : index
      %23 = vector.load %arg7[%c0_24, %c0_25] : memref<2x128xf32, #tpu.memory_space<vmem>>, vector<2x128xf32>
      tpu.vector_store %arg7[%c0_24, %c0_25], %22 {strides = array<i32>} : memref<2x128xf32, #tpu.memory_space<vmem>>, vector<2x128xf32>,
    } else {
    }
    return
  }
  func.func @transform_0(%arg0: i32) -> (i32, i32) {
    %c0_i32 = arith.constant 0 : i32
    %c0_i32_0 = arith.constant 0 : i32
    return %arg0, %c0_i32 : i32, i32
  }
  func.func @transform_1(%arg0: i32) -> (i32, i32) {
    %c0_i32 = arith.constant 0 : i32
    %c0_i32_0 = arith.constant 0 : i32
    %c0_i32_1 = arith.constant 0 : i32
    return %c0_i32, %c0_i32_0 : i32, i32
  }
  func.func @transform_2(%arg0: i32) -> (i32, i32) {
    %c0_i32 = arith.constant 0 : i32
    %c0_i32_0 = arith.constant 0 : i32
    %c0_i32_1 = arith.constant 0 : i32
    return %c0_i32, %c0_i32_0 : i32, i32
  }
  func.func @transform_3(%arg0: i32) -> (i32, i32) {
    %c0_i32 = arith.constant 0 : i32
    %c0_i32_0 = arith.constant 0 : i32
    %c0_i32_1 = arith.constant 0 : i32
    return %c0_i32, %c0_i32_0 : i32, i32
  }
  func.func @transform_4(%arg0: i32) -> (i32, i32) {
    %c0_i32 = arith.constant 0 : i32
    %c0_i32_0 = arith.constant 0 : i32
    %c0_i32_1 = arith.constant 0 : i32
    return %c0_i32, %c0_i32_0 : i32, i32
  }
  func.func @transform_5(%arg0: i32) -> (i32, i32) {
    %c0_i32 = arith.constant 0 : i32
    %c0_i32_0 = arith.constant 0 : i32
    return %arg0, %c0_i32 : i32, i32
  }
  func.func @transform_6(%arg0: i32) -> (i32, i32) {
    %c0_i32 = arith.constant 0 : i32
    %c0_i32_0 = arith.constant 0 : i32
    %c0_i32_1 = arith.constant 0 : i32
    return %c0_i32, %c0_i32_0 : i32, i32
  }
}

</mosaic_0001>

<bundles_post_ra>
// kernel: tpu_custom_call.1
= control target key start
LH: loop header
LB: loop body
LE: loop exit
PB: predicated region body
PF: predicated region fallthrough
CT: control target
= control target key end

     0   :  { %12 = vsyncpa [#allocation5], 0  ;;  %s1435_s0 = inlined_call_operand.vmem [shape: bf16[2,784], index: 0, kind: input, shape index: {}]   ;;  %s1436_s1 = inlined_call_operand.vmem [shape: f32[2,128], index: 1, kind: input, shape index: {}]   ;;  %s1437_s2 = inlined_call_operand.hbm [shape: bf16[784,128], index: 2, kind: input, shape index: {}]   ;;  %s1438_s3 = inlined_call_operand.vmem [shape: bf16[128,128], index: 3, kind: input, shape index: {}]   ;;  %s1439_s4 = inlined_call_operand.vmem [shape: bf16[128,47], index: 4, kind: input, shape index: {}]   ;;  %s1440_s5 = inlined_call_operand.hbm [shape: f32[2,47], index: 5, kind: output, shape index: {0}]   ;;  %s1441_s6 = inlined_call_operand.hbm [shape: f32[2,128], index: 6, kind: output, shape index: {1}]  }
   0x1   :  { %13 = vsyncpa [#allocation6], 0 }
   0x2   :  { %14 = vsyncpa [#allocation9], 0  ;;  %s1261_s21 = smov [#allocation4]   ;;  %s1189_s25 = scalar_lea.hbm %s1437_s2, 6272 }
   0x3   :  { %s24_s22 = sshll.u32 %s1261_s21, 4  ;;  %p1190_p0 = scmp.ne.s32.totalorder %s1437_s2, %s1189_s25  ;;  %s25_s22 = int_to_ptr.vmem [resolvable:$true] %s24_s22 }
   0x4   :  { %p1193_p1 = scmp.lt.u32.totalorder %s1189_s25, %s1437_s2 }
   0x6   :  { %p1195_p2 = pnand %p1193_p1, %p1190_p0 }
   0x8   :  { %1198 = shalt.err (!%p1195_p2)
}
   0x9   :  { %s1199_s30 = scalar_lea.vmem %s25_s22, 6272  ;;  %p1204_p4 = scmp.lt.s32.totalorder %s25_s22, %s25_s22 }
   0xa   :  { %p1200_p3 = scmp.ne.s32.totalorder %s25_s22, %s1199_s30  ;;  %p1205_p5 = scmp.lt.s32.totalorder %s1199_s30, %s1199_s30 }
   0xc   :  { %p1206_p6 = por %p1205_p5, %p1204_p4 }
   0xe   :  { %p1207_p7 = pnand %p1206_p6, %p1200_p3 }
  0x10   :  { %1210 = shalt.err (!%p1207_p7)
}
  0x11   :  { %s1262_s7 = smov 64   ;;  %s1263_s8 = smov 4  }
  0x12   :  { %30 = dma.hbm_to_vmem [thread:$0]  %s1437_s2, 6272, %s25_s22, [#allocation5], %s1262_s7, %s1262_s7, %s1263_s8  }
  0x13   :  { %1255 = dma.done.wait [#allocation5], 6272  }
  0x14   :  { %1256 = vsyncadd [#allocation5], 4294961024  ;;  %v1264_v0 = vmov 0.0   ;;  %vm1265_vm0 = vmmov 0   ;;  %v1121_v1 = vld [vmem:[%s1438_s3] sm:$0xff]   ;;  %v1124_v4 = vld [vmem:[%s1438_s3 + $0x8] sm:$0xff]   ;;  %v255_v17 = vlaneseq }
  0x15   :  { %1060 = vmatprep.subr.bf16.mxu0 %v1264_v0  ;;  %1076 = vmatprep.mubr.msk.bf16.mxu0 %vm1265_vm0, %v1264_v0  ;;  %v1122_v2 = vld [vmem:[#allocation4 + $0x40] sm:$0xff]   ;;  %v1125_v5 = vld [vmem:[#allocation4 + $0x48] sm:$0xff]   ;;  %v1128_v8 = vld [vmem:[#allocation4 + $0x50] sm:$0xff]   ;;  %v1266_v15 = vmov 1966171168   ;;  %vm599_vm1 = vcmask 130048  }
  0x16   :  { %1061 = vmatpush3.bf16.msra.mxu0 %v1121_v1  ;;  %v1123_v3 = vld [vmem:[#allocation4] sm:$0xff]   ;;  %983 = vmatprep.subr.bf16.mxu1 %v1122_v2  ;;  %v1126_v6 = vld [vmem:[#allocation4 + $0x8] sm:$0xff]   ;;  %v1129_v9 = vld [vmem:[#allocation4 + $0x10] sm:$0xff]   ;;  %v253_v16 = vunpack.c.l.s4 %v1266_v15  ;;  %v256_v22 = vshrl.u32 %v255_v17, 7 }
  0x17   :  { %1062 = vmatprep.subr.bf16.mxu0 %v1264_v0  ;;  %984 = vmatpush3.bf16.msra.mxu1 %v1123_v3  ;;  %v1127_v7 = vld [vmem:[%s1438_s3 + $0x10] sm:$0xff]   ;;  %v1130_v10 = vld [vmem:[%s1438_s3 + $0x18] sm:$0xff]   ;;  %v1134_v13 = vld [vmem:[#allocation4 + $0x60] sm:$0xff]  }
  0x18   :  { %985 = vmatprep.subr.bf16.mxu1 %v1125_v5  ;;  %v1131_v11 = vld [vmem:[#allocation4 + $0x58] sm:$0xff]   ;;  %v1135_v18 = vld [vmem:[#allocation4 + $0x20] sm:$0xff]   ;;  %v1137_v19 = vld [vmem:[#allocation4 + $0x68] sm:$0xff]   ;;  %v254_v21 = vunpack.c.0.s8 %v253_v16 }
  0x19   :  { %v1132_v12 = vld [vmem:[#allocation4 + $0x18] sm:$0xff]   ;;  %v1136_v20 = vld [vmem:[%s1438_s3 + $0x28] sm:$0xff]   ;;  %v1140_v24 = vld [vmem:[#allocation4 + $0x70] sm:$0xff]  }
  0x1a   :  { %1063 = vmatpush3.bf16.msra.mxu0 %v1124_v4  ;;  %v1133_v14 = vld [vmem:[%s1438_s3 + $0x20] sm:$0xff]   ;;  %v1138_v23 = vld [vmem:[#allocation4 + $0x28] sm:$0xff]   ;;  %v1345_v26 = vsub.s32 %v254_v21, %v256_v22  ;;  %v1141_v27 = vld [vmem:[#allocation4 + $0x30] sm:$0xff]  }
  0x1b   :  { %1064 = vmatprep.subr.bf16.mxu0 %v1264_v0  ;;  %986 = vmatpush3.bf16.msra.mxu1 %v1126_v6  ;;  %v1139_v25 = vld [vmem:[%s1438_s3 + $0x30] sm:$0xff]   ;;  %v1143_v28 = vld [vmem:[#allocation4 + $0x78] sm:$0xff]   ;;  %v1145_v34 = vld [vmem:[#allocation4 + $0xc0] sm:$0xff]  }
  0x1c   :  { %987 = vmatprep.subr.bf16.mxu1 %v1128_v8  ;;  %v43_v29 = vld [vmem:[%s1436_s1] sm:$0x3]  ;;  %v1142_v31 = vld [vmem:[%s1438_s3 + $0x38] sm:$0xff]   ;;  %v1148_v38 = vld [vmem:[#allocation4 + $0x140] sm:$0xff]  }
  0x1d   :  { %v45_v30 = vld [vmem:[%s1435_s0] sm:$0x7f]  ;;  %44 = vst [vmem:[#allocation2] sm:$0x3] %v43_v29  ;;  %v1152_v45 = vld [vmem:[#allocation4 + $0x148] sm:$0xff]   ;;  %v1156_v52 = vld [vmem:[#allocation4 + $0x150] sm:$0xff]  }
  0x1e   :  { %1065 = vmatpush3.bf16.msra.mxu0 %v1127_v7  ;;  %v251_v32 = vcombine.high %v45_v30, %v45_v30  ;;  %v258_v33 = vrot.slane %v45_v30, %v1345_v26  ;;  %v1144_v35 = vld [vmem:[#allocation4 + $0x38] sm:$0xff]   ;;  %v1147_v40 = vld [vmem:[#allocation4 + $0x80] sm:$0xff]   ;;  %v1150_v48 = vld [vmem:[#allocation4 + $0xc8] sm:$0xff]  }
  0x1f   :  { %1066 = vmatprep.subr.bf16.mxu0 %v1264_v0  ;;  %988 = vmatpush3.bf16.msra.mxu1 %v1129_v9  ;;  %v1149_v43 = vld [vmem:[#allocation4 + $0x100] sm:$0xff]   ;;  %v1151_v49 = vld [vmem:[#allocation4 + $0x88] sm:$0xff]   ;;  %v1154_v53 = vld [vmem:[#allocation4 + $0xd0] sm:$0xff]  }
  0x20   :  { %989 = vmatprep.subr.bf16.mxu1 %v1131_v11  ;;  %v266_v36 = vcombine.high %v258_v33, %v258_v33  ;;  %v1360_v37 = vrot.slane %v251_v32, %v1345_v26  ;;  %v1364_v41 = vrot.slane %v258_v33, %v1345_v26  ;;  %v1153_v51 = vld [vmem:[#allocation4 + $0x108] sm:$0xff]   ;;  %v1155_v54 = vld [vmem:[#allocation4 + $0x90] sm:$0xff]   ;;  %v1160_v56 = vld [vmem:[#allocation4 + $0x158] sm:$0xff]  }
  0x21   :  { %v1157_v55 = vld [vmem:[#allocation4 + $0x110] sm:$0xff]   ;;  %v1158_v57 = vld [vmem:[#allocation4 + $0xd8] sm:$0xff]   ;;  %v1164_v60 = vld [vmem:[#allocation4 + $0x160] sm:$0xff]  }
  0x22   :  { %1067 = vmatpush3.bf16.msra.mxu0 %v1130_v10  ;;  %v288_v39 = vrot.slane %v266_v36, %v1345_v26  ;;  %v267_v42 = vcombine.high %v1360_v37, %v1360_v37  ;;  %v1159_v58 = vld [vmem:[#allocation4 + $0x98] sm:$0xff]   ;;  %v1162_v61 = vld [vmem:[#allocation4 + $0xe0] sm:$0xff]   ;;  %v1168_v1 = vld [vmem:[#allocation4 + $0x168] sm:$0xff]  }
  0x23   :  { %1068 = vmatprep.subr.bf16.mxu0 %v1264_v0  ;;  %990 = vmatpush3.bf16.msra.mxu1 %v1132_v12  ;;  %v1161_v59 = vld [vmem:[#allocation4 + $0x118] sm:$0xff]   ;;  %v1163_v62 = vld [vmem:[#allocation4 + $0xa0] sm:$0xff]   ;;  %v1166_v2 = vld [vmem:[#allocation4 + $0xe8] sm:$0xff]  }
  0x24   :  { %991 = vmatprep.subr.bf16.mxu1 %v1134_v13  ;;  %635 = vmatprep.mubr.bf16.mxu1 %v288_v39  ;;  %v144_v44 = vld [vmem:[#allocation2] sm:$0x3]  ;;  %v298_v47 = vcombine.high %v288_v39, %v288_v39  ;;  %v295_v50 = vrot.slane %v267_v42, %v1345_v26  ;;  %v1165_v63 = vld [vmem:[#allocation4 + $0x120] sm:$0xff]   ;;  %v1167_v3 = vld [vmem:[#allocation4 + $0xa8] sm:$0xff]   ;;  %v281_v13 = vrot.slane %v1360_v37, %v1345_v26 }
  0x25   :  { %v145_v46 = vpack.c.bf16 %v144_v44, %v144_v44  ;;  %v1169_v4 = vld [vmem:[#allocation4 + $0x128] sm:$0xff]   ;;  %v1172_v5 = vld [vmem:[#allocation4 + $0x170] sm:$0xff]   ;;  %v1174_v9 = vld [vmem:[#allocation4 + $0xf8] sm:$0xff]  }
  0x26   :  { %1069 = vmatpush3.bf16.msra.mxu0 %v1133_v14  ;;  %v1170_v6 = vld [vmem:[#allocation4 + $0xf0] sm:$0xff]   ;;  %v1176_v10 = vld [vmem:[#allocation4 + $0x178] sm:$0xff]   ;;  %v296_v14 = vcombine.high %v1364_v41, %v1364_v41  ;;  %v1178_v15 = vld [vmem:[#allocation4 + $0x180] sm:$0xff]   ;;  %v297_v16 = vcombine.high %v281_v13, %v281_v13 }
  0x27   :  { %1070 = vmatprep.subr.bf16.mxu0 %v1264_v0  ;;  %992 = vmatpush3.bf16.msra.mxu1 %v1135_v18  ;;  %v1171_v7 = vld [vmem:[#allocation4 + $0xb0] sm:$0xff]   ;;  %v1177_v11 = vld [vmem:[#allocation4 + $0x138] sm:$0xff]   ;;  %v1180_v18 = vld [vmem:[%s1439_s4 + $0x8] sm:$0xff]  }
  0x28   :  { %993 = vmatprep.subr.bf16.mxu1 %v1137_v19  ;;  %v1173_v8 = vld [vmem:[#allocation4 + $0x130] sm:$0xff]   ;;  %v1175_v12 = vld [vmem:[#allocation4 + $0xb8] sm:$0xff]   ;;  %v1184_v22 = vld [vmem:[%s1439_s4 + $0x28] sm:$0xff]  }
  0x29   :  { %v1179_v17 = vld [vmem:[%s1439_s4] sm:$0xff]   ;;  %v1181_v19 = vld [vmem:[%s1439_s4 + $0x10] sm:$0xff]  }
  0x2a   :  { %1071 = vmatpush3.bf16.msra.mxu0 %v1136_v20  ;;  %v1182_v20 = vld [vmem:[%s1439_s4 + $0x18] sm:$0xff]   ;;  %v1183_v21 = vld [vmem:[%s1439_s4 + $0x20] sm:$0xff]  }
  0x2b   :  { %1072 = vmatprep.subr.bf16.mxu0 %v1264_v0  ;;  %994 = vmatpush3.bf16.msra.mxu1 %v1138_v23  ;;  %v1185_v23 = vld [vmem:[%s1439_s4 + $0x30] sm:$0xff]  }
  0x2c   :  { %995 = vmatprep.subr.bf16.mxu1 %v1140_v24  ;;  %v1186_v24 = vld [vmem:[%s1439_s4 + $0x38] sm:$0xff]   ;;  %s1267_s4 = smov [#allocation8]  }
  0x2d   :  { %s895_s18 = sshll.u32 %s1267_s4, 4  ;;  %s896_s18 = int_to_ptr.vmem [resolvable:$true] %s895_s18 }
  0x2e   :  { %1073 = vmatpush3.bf16.msra.mxu0 %v1139_v25  ;;  %s1211_s19 = scalar_lea.vmem %s896_s18, 32  ;;  %p1216_p9 = scmp.lt.s32.totalorder %s896_s18, %s896_s18 }
  0x2f   :  { %1074 = vmatprep.subr.bf16.mxu0 %v1264_v0  ;;  %996 = vmatpush3.bf16.msra.mxu1 %v1141_v27  ;;  %p1212_p8 = scmp.ne.s32.totalorder %s896_s18, %s1211_s19  ;;  %p1217_p10 = scmp.lt.s32.totalorder %s1211_s19, %s1211_s19 }
  0x30   :  { %997 = vmatprep.subr.bf16.mxu1 %v1143_v28 }
  0x31   :  { %p1218_p11 = por %p1217_p10, %p1216_p9 }
  0x32   :  { %1075 = vmatpush3.bf16.msra.mxu0 %v1142_v31 }
  0x33   :  { %1005 = vmatprep.subr.bf16.mxu0 %v1145_v34  ;;  %998 = vmatpush3.bf16.msra.mxu1 %v1144_v35  ;;  %p1219_p12 = pnand %p1218_p11, %p1212_p8 }
  0x34   :  { %1027 = vmatprep.subr.bf16.mxu1 %v1148_v38 }
  0x35   :  { %1077 = vmatmul.mubr.bf16.vlgmr.msra.gmra.mrb[0].mxu0 %v145_v46 }
  0x36   :  { %636 = vmatmul.mubr.bf16.vlgmr.msra.gmra.mrb[0].mxu1 %v1364_v41  ;;  %1006 = vmatpush3.bf16.msra.mxu0 %v1147_v40 }
  0x37   :  { %1028 = vmatpush3.bf16.msra.mxu1 %v1149_v43  ;;  %1007 = vmatprep.subr.bf16.mxu0 %v1150_v48 }
  0x38   :  { %1029 = vmatprep.subr.bf16.mxu1 %v1152_v45  ;;  %675 = vmatprep.mubr.bf16.mxu0 %v298_v47 }
  0x39   :  { %715 = vmatprep.mubr.bf16.mxu1 %v295_v50 }
  0x3a   :  { %1008 = vmatpush3.bf16.msra.mxu0 %v1151_v49 }
  0x3b   :  { %1030 = vmatpush3.bf16.msra.mxu1 %v1153_v51  ;;  %1009 = vmatprep.subr.bf16.mxu0 %v1154_v53 }
  0x3c   :  { %1031 = vmatprep.subr.bf16.mxu1 %v1156_v52 }
  0x3e   :  { %1010 = vmatpush3.bf16.msra.mxu0 %v1155_v54 }
  0x3f   :  { %1032 = vmatpush3.bf16.msra.mxu1 %v1157_v55  ;;  %1011 = vmatprep.subr.bf16.mxu0 %v1158_v57 }
  0x40   :  { %1033 = vmatprep.subr.bf16.mxu1 %v1160_v56 }
  0x42   :  { %1012 = vmatpush3.bf16.msra.mxu0 %v1159_v58 }
  0x43   :  { %1034 = vmatpush3.bf16.msra.mxu1 %v1161_v59  ;;  %1013 = vmatprep.subr.bf16.mxu0 %v1162_v61 }
  0x44   :  { %1035 = vmatprep.subr.bf16.mxu1 %v1164_v60 }
  0x46   :  { %1014 = vmatpush3.bf16.msra.mxu0 %v1163_v62 }
  0x47   :  { %1036 = vmatpush3.bf16.msra.mxu1 %v1165_v63  ;;  %1015 = vmatprep.subr.bf16.mxu0 %v1166_v2 }
  0x48   :  { %1037 = vmatprep.subr.bf16.mxu1 %v1168_v1 }
  0x4a   :  { %1016 = vmatpush3.bf16.msra.mxu0 %v1167_v3 }
  0x4b   :  { %1038 = vmatpush3.bf16.msra.mxu1 %v1169_v4  ;;  %1017 = vmatprep.subr.bf16.mxu0 %v1170_v6 }
  0x4c   :  { %1039 = vmatprep.subr.bf16.mxu1 %v1172_v5 }
  0x4e   :  { %1018 = vmatpush3.bf16.msra.mxu0 %v1171_v7 }
  0x4f   :  { %1040 = vmatpush3.bf16.msra.mxu1 %v1173_v8  ;;  %1019 = vmatprep.subr.bf16.mxu0 %v1174_v9 }
  0x50   :  { %1041 = vmatprep.subr.bf16.mxu1 %v1176_v10 }
  0x52   :  { %1020 = vmatpush3.bf16.msra.mxu0 %v1175_v12 }
  0x53   :  { %1042 = vmatpush3.bf16.msra.mxu1 %v1177_v11  ;;  %1080 = vmatprep.subr.bf16.mxu0 %v1264_v0 }
  0x54   :  { %1086 = vmatprep.subr.bf16.mxu1 %v1264_v0 }
  0x55   :  { %676 = vmatmul.mubr.bf16.vlgmr.msra.gmra.mrb[4].mxu0 %v296_v14 }
  0x56   :  { %716 = vmatmul.mubr.bf16.vlgmr.msra.gmra.mrb[4].mxu1 %v281_v13  ;;  %1081 = vmatpush3.bf16.msra.mxu0 %v1178_v15 }
  0x57   :  { %1102 = vmatprep.mubr.msk.bf16.mxu1 %vm1265_vm0, %v1264_v0  ;;  %1082 = vmatprep.mubr.msk.bf16.mxu0 %vm1265_vm0, %v1264_v0 }
  0x58   :  { %1087 = vmatpush3.bf16.msra.mxu1 %v1179_v17 }
  0x59   :  { %1088 = vmatprep.subr.bf16.mxu1 %v1264_v0 }
  0x5c   :  { %1089 = vmatpush3.bf16.msra.mxu1 %v1180_v18 }
  0x5d   :  { %1083 = vmatmul.mubr.msk.bf16.vlgmr.msra.gmra.mrb[0].mxu0 %vm599_vm1, %v297_v16  ;;  %1090 = vmatprep.subr.bf16.mxu1 %v1264_v0 }
  0x60   :  { %1091 = vmatpush3.bf16.msra.mxu1 %v1181_v19 }
  0x61   :  { %1092 = vmatprep.subr.bf16.mxu1 %v1264_v0 }
  0x64   :  { %1093 = vmatpush3.bf16.msra.mxu1 %v1182_v20 }
  0x65   :  { %1094 = vmatprep.subr.bf16.mxu1 %v1264_v0 }
  0x68   :  { %1095 = vmatpush3.bf16.msra.mxu1 %v1183_v21 }
  0x69   :  { %1096 = vmatprep.subr.bf16.mxu1 %v1264_v0 }
  0x6c   :  { %1097 = vmatpush3.bf16.msra.mxu1 %v1184_v22 }
  0x6d   :  { %1098 = vmatprep.subr.bf16.mxu1 %v1264_v0 }
  0x70   :  { %1099 = vmatpush3.bf16.msra.mxu1 %v1185_v23 }
  0x71   :  { %1100 = vmatprep.subr.bf16.mxu1 %v1264_v0 }
  0x74   :  { %1101 = vmatpush3.bf16.msra.mxu1 %v1186_v24 }
 0x109   :  { %v999_v25 = vpop.f32.mrb[0].mxu1 }
 0x10a   :  { %v1000_v26 = vpop.f32.mrb[1].mxu1 }
 0x10b   :  { %v1001_v27 = vadd.f32 %v1000_v26, %v999_v25  ;;  %v1002_v28 = vpop.f32.mrb[2].mxu1 }
 0x10c   :  { %v1003_v29 = vpop.f32.mrb[3].mxu1 }
 0x128   :  { %v1021_v31 = vpop.f32.mrb[4].mxu0 }
 0x129   :  { %v1043_v30 = vpop.f32.mrb[4].mxu1  ;;  %v1022_v33 = vpop.f32.mrb[5].mxu0 }
 0x12a   :  { %v1044_v32 = vpop.f32.mrb[5].mxu1  ;;  %v1023_v36 = vadd.f32 %v1022_v33, %v1021_v31  ;;  %v1024_v37 = vpop.f32.mrb[6].mxu0 }
 0x12b   :  { %v1045_v34 = vadd.f32 %v1044_v32, %v1043_v30  ;;  %v1046_v35 = vpop.f32.mrb[6].mxu1  ;;  %v1025_v39 = vpop.f32.mrb[7].mxu0 }
 0x12c   :  { %v1047_v38 = vpop.f32.mrb[7].mxu1  ;;  %v1106_v40 = vadd.f32 %v1023_v36, %v1001_v27 }
 0x12e   :  { %v1107_v41 = vadd.f32 %v1106_v40, %v1045_v34 }
 0x130   :  { %v757_v42 = vpop.f32.mrb[0].mxu0 }
 0x131   :  { %v1108_v0 = vadd.f32 %v1107_v41, %v757_v42  ;;  %v1084_v43 = vpop.f32.mrb[1].mxu0 }
 0x132   :  { %v760_v44 = vpop.f32.mrb[2].mxu0 }
 0x133   :  { %1187 = vtanh.f32 %v1108_v0  ;;  %v1085_v45 = vpop.f32.mrb[3].mxu0 }
 0x13d   :  { %v1188_v46 = vpop.eup %1187 }
 0x13e   :  { %764 = vst [vmem:[#allocation3] sm:$0x3] %v1188_v46  ;;  %765 = vst [vmem:[#allocation2] sm:$0x3] %v1188_v46 }
 0x145   :  { %v766_v47 = vld [vmem:[#allocation3] sm:$0x3]  ;;  %v877_v48 = vld [vmem:[#allocation2] sm:$0x3] }
 0x146   :  { %v767_v49 = vpack.c.bf16 %v766_v47, %v766_v47  ;;  %878 = vst [vmem:[#allocation8] sm:$0x3] %v877_v48 }
 0x148   :  { %1103 = vmatmul.mubr.bf16.vlgmr.msra.gmra.mrb[8].mxu1 %v767_v49 }
 0x149   :  { %1222 = shalt.err (!%p1219_p12)
}
 0x14a   :  { %s1223_s22 = scalar_lea.hbm %s1441_s6, 32 }
 0x14b   :  { %p1224_p13 = scmp.ne.s32.totalorder %s1441_s6, %s1223_s22  ;;  %p1227_p0 = scmp.lt.u32.totalorder %s1223_s22, %s1441_s6 }
 0x14d   :  { %p1229_p1 = pnand %p1227_p0, %p1224_p13 }
 0x14f   :  { %1232 = shalt.err (!%p1229_p1)
}
 0x150   :  { %898 = dma.vmem_to_hbm [thread:$0]  %s896_s18, 32, %s1441_s6, [#allocation9]   ;;  %vm872_vm2 = vcmask 377856  }
 0x151   :  { %s1268_s29 = smov [#allocation7]  }
 0x152   :  { %s885_s0 = sshll.u32 %s1268_s29, 4  ;;  %s886_s0 = int_to_ptr.vmem [resolvable:$true] %s885_s0 }
 0x153   :  { %s1233_s1 = scalar_lea.vmem %s886_s0, 32  ;;  %p1238_p3 = scmp.lt.s32.totalorder %s886_s0, %s886_s0 }
 0x154   :  { %p1234_p2 = scmp.ne.s32.totalorder %s886_s0, %s1233_s1  ;;  %p1239_p4 = scmp.lt.s32.totalorder %s1233_s1, %s1233_s1 }
 0x156   :  { %p1240_p5 = por %p1239_p4, %p1238_p3 }
 0x158   :  { %p1241_p6 = pnand %p1240_p5, %p1234_p2 }
 0x21b   :  { %v866_v50 = vpop.f32.mrb[8].mxu1 }
 0x21c   :  { %v1104_v51 = vpop.f32.mrb[9].mxu1  ;;  %873 = vst.msk [vmem:[#allocation7] sm:$0x3] %vm872_vm2, %v866_v50 }
 0x21d   :  { %v869_v52 = vpop.f32.mrb[10].mxu1 }
 0x21e   :  { %1244 = shalt.err (!%p1241_p6)
}
 0x21f   :  { %s1245_s7 = scalar_lea.hbm %s1440_s5, 32 }
 0x220   :  { %p1246_p7 = scmp.ne.s32.totalorder %s1440_s5, %s1245_s7  ;;  %p1249_p8 = scmp.lt.u32.totalorder %s1245_s7, %s1440_s5 }
 0x222   :  { %p1251_p9 = pnand %p1249_p8, %p1246_p7 }
 0x224   :  { %1254 = shalt.err (!%p1251_p9)
}
 0x225   :  { %888 = dma.vmem_to_hbm [thread:$0]  %s886_s0, 32, %s1440_s5, [#allocation6]   ;;  %v1105_v53 = vpop.f32.mrb[11].mxu1 }
 0x226   :  { %1257 = dma.done.wait [#allocation6], 32  }
 0x227   :  { %1258 = vsyncadd [#allocation6], 4294967264 }
 0x228   :  { %1259 = dma.done.wait [#allocation9], 32  }
 0x229   :  { %1260 = vsyncadd [#allocation9], 4294967264 }
 0x22a   :  { %905 = vsyncpa [#allocation5], 1 }
 0x22b   :  { %906 = vsyncpa [#allocation6], 1 }
 0x22c   :  { %907 = vsyncpa [#allocation9], 1 }

</bundles_post_ra>
